<compile_context>
chip_gen: v7x
topology: tpu7x:2x2x1
jax: 0.10.0
libtpu: 0.0.40
codegen_flags: <defaults>
</compile_context>

<pallas_src>
import functools

import jax
import jax.numpy as jnp
import numpy as np
from jax.experimental import pallas as pl
from jax.experimental.pallas import tpu as pltpu

LANE = 128


def _round_up(n, m):
    return ((n + m - 1) // m) * m


def _mlp_kernel(x_ref, w1_ref, b1_ref, w2_ref, b2_ref, w3_ref, b3_ref, o_ref):
    # x tile: (TILE_M, obs_dim) bf16. Weights bf16, biases f32.
    # Three MXU matmuls with f32 accumulation; bias + ReLU on the VPU in f32.
    x = x_ref[...]
    h1 = jnp.dot(x, w1_ref[...], preferred_element_type=jnp.float32) + b1_ref[...]
    h1 = jnp.maximum(h1, 0.0).astype(w2_ref.dtype)
    h2 = jnp.dot(h1, w2_ref[...], preferred_element_type=jnp.float32) + b2_ref[...]
    h2 = jnp.maximum(h2, 0.0).astype(w3_ref.dtype)
    out = jnp.dot(h2, w3_ref[...], preferred_element_type=jnp.float32) + b3_ref[...]
    o_ref[...] = out.astype(o_ref.dtype)


@functools.partial(jax.jit, static_argnames=("tile_m",))
def speaker_q_network_forward(x, params, *, tile_m=512):
    """x: (batch, obs_dim) float32. params: dict of w1,b1,w2,b2,w3,b3 (w: (in,out), b: (1,out))."""
    batch, obs_dim = x.shape
    hidden = params["w1"].shape[1]
    action_dim = params["w3"].shape[1]

    # --- dtype plumbing: bf16 activations/weights, f32 biases + accumulation -------------
    xb = x.astype(jnp.bfloat16)
    w1 = params["w1"].astype(jnp.bfloat16)
    w2 = params["w2"].astype(jnp.bfloat16)
    w3 = params["w3"].astype(jnp.bfloat16)
    b1 = params["b1"].astype(jnp.float32)
    b2 = params["b2"].astype(jnp.float32)
    b3 = params["b3"].astype(jnp.float32)

    # --- lane-dense output: pad action_dim up to a multiple of 128 -----------------------
    act_pad = _round_up(max(action_dim, LANE), LANE)
    w3p = jnp.pad(w3, ((0, 0), (0, act_pad - action_dim)))
    b3p = jnp.pad(b3, ((0, 0), (0, act_pad - action_dim)))

    # --- batch tiling: shrink the tile for tiny batches, pad batch to a tile multiple ----
    tm = min(tile_m, _round_up(batch, 8))
    padded_batch = _round_up(batch, tm)
    if padded_batch != batch:
        xb = jnp.pad(xb, ((0, padded_batch - batch), (0, 0)))
    grid = (padded_batch // tm,)

    const2d = lambda i: (0, 0)
    in_specs = [
        pl.BlockSpec((tm, obs_dim), lambda i: (i, 0)),       # x tile (streamed)
        pl.BlockSpec((obs_dim, hidden), const2d),            # w1 (resident)
        pl.BlockSpec((1, hidden), const2d),                  # b1
        pl.BlockSpec((hidden, hidden), const2d),             # w2
        pl.BlockSpec((1, hidden), const2d),                  # b2
        pl.BlockSpec((hidden, act_pad), const2d),            # w3 (padded N)
        pl.BlockSpec((1, act_pad), const2d),                 # b3 (padded N)
    ]
    out_specs = pl.BlockSpec((tm, act_pad), lambda i: (i, 0))

    flops = 2 * padded_batch * (obs_dim * hidden + hidden * hidden + hidden * act_pad)
    bytes_accessed = (
        padded_batch * obs_dim * 2                      # x (bf16)
        + (obs_dim * hidden + hidden * hidden + hidden * act_pad) * 2  # weights (bf16)
        + (2 * hidden + act_pad) * 4                    # biases (f32)
        + padded_batch * act_pad * 4                    # output (f32)
    )

    out = pl.pallas_call(
        _mlp_kernel,
        out_shape=jax.ShapeDtypeStruct((padded_batch, act_pad), jnp.float32),
        grid=grid,
        in_specs=in_specs,
        out_specs=out_specs,
        compiler_params=pltpu.CompilerParams(
            dimension_semantics=("parallel",),
            vmem_limit_bytes=32 * 1024 * 1024,
        ),
        cost_estimate=pl.CostEstimate(
            flops=flops, transcendentals=0, bytes_accessed=bytes_accessed
        ),
    )(xb, w1, b1, w2, b2, w3p, b3p)

    # slice back to the logical (batch, action_dim) result
    return out[:batch, :action_dim]


def init_params(key, obs_dim, action_dim, hidden=128):
    """Deterministic PyTorch-style (Kaiming-uniform-ish) init, f32 master weights."""
    ks = jax.random.split(key, 6)

    def linear(kw, kb, fan_in, fan_out):
        bound = 1.0 / np.sqrt(fan_in)
        w = jax.random.uniform(kw, (fan_in, fan_out), jnp.float32, -bound, bound)
        b = jax.random.uniform(kb, (1, fan_out), jnp.float32, -bound, bound)
        return w, b

    w1, b1 = linear(ks[0], ks[1], obs_dim, hidden)
    w2, b2 = linear(ks[2], ks[3], hidden, hidden)
    w3, b3 = linear(ks[4], ks[5], hidden, action_dim)
    return {"w1": w1, "b1": b1, "w2": w2, "b2": b2, "w3": w3, "b3": b3}


def _reference(x, p):
    # Match the kernel's bf16 weight/activation rounding, f32 accumulation.
    def r(a):
        return a.astype(jnp.bfloat16).astype(jnp.float32)

    h1 = jnp.maximum(r(x) @ r(p["w1"]) + p["b1"], 0.0)
    h2 = jnp.maximum(r(h1) @ r(p["w2"]) + p["b2"], 0.0)
    return r(h2) @ r(p["w3"]) + p["b3"]


if __name__ == "__main__":
    batch, obs_dim, action_dim = 2, 32, 8

    key = jax.random.PRNGKey(0)
    k_x, k_p = jax.random.split(key)
    x = jax.random.normal(k_x, (batch, obs_dim), jnp.float32)
    params = init_params(k_p, obs_dim, action_dim)

    out = speaker_q_network_forward(x, params)
    out = jax.block_until_ready(out)
    assert out.shape == (batch, action_dim)

    ref = _reference(x, params)
    np.testing.assert_allclose(np.asarray(out), np.asarray(ref), rtol=1e-2, atol=1e-2)

    print("KERNEL_OK")
</pallas_src>

<mosaic_0001>
module attributes {stable_mosaic.version = 11 : i64} {
  func.func @_mlp_kernel(%arg0: i32, %arg1: memref<8x32xbf16, #tpu.memory_space<vmem>>, %arg2: memref<32x128xbf16, #tpu.memory_space<vmem>>, %arg3: memref<1x128xf32, #tpu.memory_space<vmem>>, %arg4: memref<128x128xbf16, #tpu.memory_space<vmem>>, %arg5: memref<1x128xf32, #tpu.memory_space<vmem>>, %arg6: memref<128x128xbf16, #tpu.memory_space<vmem>>, %arg7: memref<1x128xf32, #tpu.memory_space<vmem>>, %arg8: memref<8x128xf32, #tpu.memory_space<vmem>>) attributes {dimension_semantics = [#tpu.dimension_semantics<parallel>], iteration_bounds = array<i64: 1>, scalar_prefetch = 0 : i64, scratch_operands = 0 : i64, tpu.core_type = #tpu.core_type<tc>, window_params = [{transform_indices = @transform_0, window_bounds = array<i64: 8, 32>}, {pipeline_mode = #tpu.pipeline_mode<synchronous>, transform_indices = @transform_1, window_bounds = array<i64: 32, 128>}, {pipeline_mode = #tpu.pipeline_mode<synchronous>, transform_indices = @transform_2, window_bounds = array<i64: 1, 128>}, {pipeline_mode = #tpu.pipeline_mode<synchronous>, transform_indices = @transform_3, window_bounds = array<i64: 128, 128>}, {pipeline_mode = #tpu.pipeline_mode<synchronous>, transform_indices = @transform_4, window_bounds = array<i64: 1, 128>}, {pipeline_mode = #tpu.pipeline_mode<synchronous>, transform_indices = @transform_5, window_bounds = array<i64: 128, 128>}, {pipeline_mode = #tpu.pipeline_mode<synchronous>, transform_indices = @transform_6, window_bounds = array<i64: 1, 128>}, {transform_indices = @transform_7, window_bounds = array<i64: 8, 128>}]} {
    %c0 = arith.constant 0 : index
    %c0_0 = arith.constant 0 : index
    %0 = vector.load %arg1[%c0, %c0_0] : memref<8x32xbf16, #tpu.memory_space<vmem>>, vector<8x32xbf16>
    %c0_1 = arith.constant 0 : index
    %c0_2 = arith.constant 0 : index
    %1 = vector.load %arg2[%c0_1, %c0_2] : memref<32x128xbf16, #tpu.memory_space<vmem>>, vector<32x128xbf16>
    %cst = arith.constant dense<0.000000e+00> : vector<8x128xf32>
    %2 = tpu.matmul %0, %1, %cst {dimension_numbers = #tpu.dot_dimension_numbers<[1], [0], [0], [1], [0, 0, 1, 1], [], []>} : vector<8x32xbf16>, vector<32x128xbf16>, vector<8x128xf32> -> vector<8x128xf32>
    %c0_3 = arith.constant 0 : index
    %c0_4 = arith.constant 0 : index
    %3 = vector.load %arg3[%c0_3, %c0_4] : memref<1x128xf32, #tpu.memory_space<vmem>>, vector<1x128xf32>
    %4 = vector.broadcast %3 : vector<1x128xf32> to vector<8x128xf32>
    %5 = arith.addf %2, %4 : vector<8x128xf32>
    %cst_5 = arith.constant 0.000000e+00 : f32
    %6 = vector.broadcast %cst_5 : f32 to vector<8x128xf32>
    %7 = arith.maximumf %5, %6 : vector<8x128xf32>
    %8 = arith.truncf %7 : vector<8x128xf32> to vector<8x128xbf16>
    %c0_6 = arith.constant 0 : index
    %c0_7 = arith.constant 0 : index
    %9 = vector.load %arg4[%c0_6, %c0_7] : memref<128x128xbf16, #tpu.memory_space<vmem>>, vector<128x128xbf16>
    %cst_8 = arith.constant dense<0.000000e+00> : vector<8x128xf32>
    %10 = tpu.matmul %8, %9, %cst_8 {dimension_numbers = #tpu.dot_dimension_numbers<[1], [0], [0], [1], [0, 0, 1, 1], [], []>} : vector<8x128xbf16>, vector<128x128xbf16>, vector<8x128xf32> -> vector<8x128xf32>
    %c0_9 = arith.constant 0 : index
    %c0_10 = arith.constant 0 : index
    %11 = vector.load %arg5[%c0_9, %c0_10] : memref<1x128xf32, #tpu.memory_space<vmem>>, vector<1x128xf32>
    %12 = vector.broadcast %11 : vector<1x128xf32> to vector<8x128xf32>
    %13 = arith.addf %10, %12 : vector<8x128xf32>
    %cst_11 = arith.constant 0.000000e+00 : f32
    %14 = vector.broadcast %cst_11 : f32 to vector<8x128xf32>
    %15 = arith.maximumf %13, %14 : vector<8x128xf32>
    %16 = arith.truncf %15 : vector<8x128xf32> to vector<8x128xbf16>
    %c0_12 = arith.constant 0 : index
    %c0_13 = arith.constant 0 : index
    %17 = vector.load %arg6[%c0_12, %c0_13] : memref<128x128xbf16, #tpu.memory_space<vmem>>, vector<128x128xbf16>
    %cst_14 = arith.constant dense<0.000000e+00> : vector<8x128xf32>
    %18 = tpu.matmul %16, %17, %cst_14 {dimension_numbers = #tpu.dot_dimension_numbers<[1], [0], [0], [1], [0, 0, 1, 1], [], []>} : vector<8x128xbf16>, vector<128x128xbf16>, vector<8x128xf32> -> vector<8x128xf32>
    %c0_15 = arith.constant 0 : index
    %c0_16 = arith.constant 0 : index
    %19 = vector.load %arg7[%c0_15, %c0_16] : memref<1x128xf32, #tpu.memory_space<vmem>>, vector<1x128xf32>
    %20 = vector.broadcast %19 : vector<1x128xf32> to vector<8x128xf32>
    %21 = arith.addf %18, %20 : vector<8x128xf32>
    %c0_17 = arith.constant 0 : index
    %c0_18 = arith.constant 0 : index
    %22 = vector.load %arg8[%c0_17, %c0_18] : memref<8x128xf32, #tpu.memory_space<vmem>>, vector<8x128xf32>
    tpu.vector_store %arg8[%c0_17, %c0_18], %21 {strides = array<i32>} : memref<8x128xf32, #tpu.memory_space<vmem>>, vector<8x128xf32>,
    return
  }
  func.func @transform_0(%arg0: i32) -> (i32, i32) {
    %c0_i32 = arith.constant 0 : i32
    %c0_i32_0 = arith.constant 0 : i32
    return %arg0, %c0_i32 : i32, i32
  }
  func.func @transform_1(%arg0: i32) -> (i32, i32) {
    %c0_i32 = arith.constant 0 : i32
    %c0_i32_0 = arith.constant 0 : i32
    %c0_i32_1 = arith.constant 0 : i32
    return %c0_i32, %c0_i32_0 : i32, i32
  }
  func.func @transform_2(%arg0: i32) -> (i32, i32) {
    %c0_i32 = arith.constant 0 : i32
    %c0_i32_0 = arith.constant 0 : i32
    %c0_i32_1 = arith.constant 0 : i32
    return %c0_i32, %c0_i32_0 : i32, i32
  }
  func.func @transform_3(%arg0: i32) -> (i32, i32) {
    %c0_i32 = arith.constant 0 : i32
    %c0_i32_0 = arith.constant 0 : i32
    %c0_i32_1 = arith.constant 0 : i32
    return %c0_i32, %c0_i32_0 : i32, i32
  }
  func.func @transform_4(%arg0: i32) -> (i32, i32) {
    %c0_i32 = arith.constant 0 : i32
    %c0_i32_0 = arith.constant 0 : i32
    %c0_i32_1 = arith.constant 0 : i32
    return %c0_i32, %c0_i32_0 : i32, i32
  }
  func.func @transform_5(%arg0: i32) -> (i32, i32) {
    %c0_i32 = arith.constant 0 : i32
    %c0_i32_0 = arith.constant 0 : i32
    %c0_i32_1 = arith.constant 0 : i32
    return %c0_i32, %c0_i32_0 : i32, i32
  }
  func.func @transform_6(%arg0: i32) -> (i32, i32) {
    %c0_i32 = arith.constant 0 : i32
    %c0_i32_0 = arith.constant 0 : i32
    %c0_i32_1 = arith.constant 0 : i32
    return %c0_i32, %c0_i32_0 : i32, i32
  }
  func.func @transform_7(%arg0: i32) -> (i32, i32) {
    %c0_i32 = arith.constant 0 : i32
    %c0_i32_0 = arith.constant 0 : i32
    return %arg0, %c0_i32 : i32, i32
  }
}

</mosaic_0001>

<bundles_post_ra>
// kernel: speaker_q_network_forward.1
= control target key start
LH: loop header
LB: loop body
LE: loop exit
PB: predicated region body
PF: predicated region fallthrough
CT: control target
= control target key end

     0   :  { %v437_v0 = vmov 0.0   ;;  %vm438_vm0 = vmmov 0   ;;  %vm51_vm1 = vcmask 261120   ;;  %s572_s1 = inlined_call_operand.vmem [shape: bf16[32,128], index: 1, kind: input, shape index: {}]   ;;  %s573_s3 = inlined_call_operand.vmem [shape: bf16[128,128], index: 3, kind: input, shape index: {}]   ;;  %s574_s0 = inlined_call_operand.vmem [shape: bf16[8,32], index: 0, kind: input, shape index: {}]   ;;  %s575_s5 = inlined_call_operand.vmem [shape: bf16[128,128], index: 5, kind: input, shape index: {}]   ;;  %s576_s2 = inlined_call_operand.vmem [shape: f32[1,128], index: 2, kind: input, shape index: {}]   ;;  %s577_s4 = inlined_call_operand.vmem [shape: f32[1,128], index: 4, kind: input, shape index: {}]   ;;  %s578_s6 = inlined_call_operand.vmem [shape: f32[1,128], index: 6, kind: input, shape index: {}]   ;;  %s579_s7 = inlined_call_operand.vmem [shape: f32[8,128], index: 7, kind: output, shape index: {}]  }
   0x1   :  { %369 = vmatprep.subr.bf16.mxu0 %v437_v0  ;;  %v419_v1 = vld [vmem:[%s572_s1] sm:$0xff]   ;;  %373 = vmatprep.mubr.msk.bf16.mxu0 %vm438_vm0, %v437_v0  ;;  %v420_v2 = vld [vmem:[%s572_s1 + $0x8] sm:$0xff]   ;;  %v423_v6 = vld [vmem:[%s573_s3 + $0x10] sm:$0xff]  }
   0x2   :  { %377 = vmatprep.subr.bf16.mxu1 %v437_v0  ;;  %393 = vmatprep.mubr.msk.bf16.mxu1 %vm438_vm0, %v437_v0  ;;  %v421_v3 = vld [vmem:[%s573_s3] sm:$0xff]   ;;  %v422_v4 = vld [vmem:[%s573_s3 + $0x8] sm:$0xff]   ;;  %v424_v7 = vld [vmem:[%s573_s3 + $0x18] sm:$0xff]  }
   0x3   :  { %370 = vmatpush3.bf16.msra.mxu0 %v419_v1  ;;  %378 = vmatpush3.bf16.msra.mxu1 %v421_v3  ;;  %v27_v5 = vld [vmem:[%s574_s0] sm:$0xf]  ;;  %v426_v9 = vld [vmem:[%s573_s3 + $0x28] sm:$0xff]   ;;  %v427_v10 = vld [vmem:[%s573_s3 + $0x30] sm:$0xff]  }
   0x4   :  { %371 = vmatprep.subr.bf16.mxu0 %v437_v0  ;;  %379 = vmatprep.subr.bf16.mxu1 %v437_v0  ;;  %v425_v8 = vld [vmem:[%s573_s3 + $0x20] sm:$0xff]   ;;  %v428_v11 = vld [vmem:[%s573_s3 + $0x38] sm:$0xff]   ;;  %v430_v13 = vld [vmem:[%s575_s5 + $0x8] sm:$0xff]  }
   0x5   :  { %v429_v12 = vld [vmem:[%s575_s5] sm:$0xff]   ;;  %v431_v14 = vld [vmem:[%s575_s5 + $0x10] sm:$0xff]   ;;  %v432_v15 = vld [vmem:[%s575_s5 + $0x18] sm:$0xff]  }
   0x6   :  { %v433_v16 = vld [vmem:[%s575_s5 + $0x20] sm:$0xff]   ;;  %v434_v17 = vld [vmem:[%s575_s5 + $0x28] sm:$0xff]   ;;  %v435_v26 = vld [vmem:[%s575_s5 + $0x30] sm:$0xff]  }
   0x7   :  { %372 = vmatpush3.bf16.msra.mxu0 %v420_v2  ;;  %380 = vmatpush3.bf16.msra.mxu1 %v422_v4  ;;  %v326_v18 = vld [vmem:[%s576_s2] ss:$0 sm:$0xff]  ;;  %v436_v27 = vld [vmem:[%s575_s5 + $0x38] sm:$0xff]  }
   0x8   :  { %397 = vmatprep.subr.bf16.mxu0 %v437_v0  ;;  %381 = vmatprep.subr.bf16.mxu1 %v437_v0  ;;  %v330_v28 = vld [vmem:[%s577_s4] ss:$0 sm:$0xff] }
   0x9   :  { %v339_v36 = vld [vmem:[%s578_s6] ss:$0 sm:$0xff] }
   0xa   :  { %374 = vmatmul.mubr.msk.bf16.vlgmr.msra.gmra.mrb[0].mxu0 %vm51_vm1, %v27_v5 }
   0xb   :  { %413 = vmatprep.mubr.msk.bf16.mxu0 %vm438_vm0, %v437_v0  ;;  %382 = vmatpush3.bf16.msra.mxu1 %v423_v6 }
   0xc   :  { %383 = vmatprep.subr.bf16.mxu1 %v437_v0  ;;  %398 = vmatpush3.bf16.msra.mxu0 %v429_v12 }
   0xd   :  { %399 = vmatprep.subr.bf16.mxu0 %v437_v0 }
   0xf   :  { %384 = vmatpush3.bf16.msra.mxu1 %v424_v7 }
  0x10   :  { %385 = vmatprep.subr.bf16.mxu1 %v437_v0  ;;  %400 = vmatpush3.bf16.msra.mxu0 %v430_v13 }
  0x11   :  { %401 = vmatprep.subr.bf16.mxu0 %v437_v0 }
  0x13   :  { %386 = vmatpush3.bf16.msra.mxu1 %v425_v8 }
  0x14   :  { %387 = vmatprep.subr.bf16.mxu1 %v437_v0  ;;  %402 = vmatpush3.bf16.msra.mxu0 %v431_v14 }
  0x15   :  { %403 = vmatprep.subr.bf16.mxu0 %v437_v0 }
  0x17   :  { %388 = vmatpush3.bf16.msra.mxu1 %v426_v9 }
  0x18   :  { %389 = vmatprep.subr.bf16.mxu1 %v437_v0  ;;  %404 = vmatpush3.bf16.msra.mxu0 %v432_v15 }
  0x19   :  { %405 = vmatprep.subr.bf16.mxu0 %v437_v0 }
  0x1b   :  { %390 = vmatpush3.bf16.msra.mxu1 %v427_v10 }
  0x1c   :  { %391 = vmatprep.subr.bf16.mxu1 %v437_v0  ;;  %406 = vmatpush3.bf16.msra.mxu0 %v433_v16 }
  0x1d   :  { %407 = vmatprep.subr.bf16.mxu0 %v437_v0 }
  0x1f   :  { %392 = vmatpush3.bf16.msra.mxu1 %v428_v11 }
  0x20   :  { %408 = vmatpush3.bf16.msra.mxu0 %v434_v17 }
  0x21   :  { %409 = vmatprep.subr.bf16.mxu0 %v437_v0 }
  0x24   :  { %410 = vmatpush3.bf16.msra.mxu0 %v435_v26 }
  0x25   :  { %411 = vmatprep.subr.bf16.mxu0 %v437_v0 }
  0x28   :  { %412 = vmatpush3.bf16.msra.mxu0 %v436_v27 }
  0xdd   :  { %v89_v19 = vpop.f32.mrb[0].mxu0 }
  0xde   :  { %v90_v20 = vadd.f32 %v326_v18, %v89_v19  ;;  %v375_v21 = vpop.f32.mrb[1].mxu0 }
  0xdf   :  { %v92_v22 = vpop.f32.mrb[2].mxu0 }
  0xe0   :  { %v95_v23 = vmax.f32 %v90_v20, 0.0  ;;  %v376_v24 = vpop.f32.mrb[3].mxu0 }
  0xe2   :  { %v96_v25 = vpack.c.bf16 %v95_v23, %v95_v23 }
  0xe4   :  { %394 = vmatmul.mubr.bf16.vlgmr.msra.gmra.mrb[0].mxu1 %v96_v25 }
 0x1b7   :  { %v202_v29 = vpop.f32.mrb[0].mxu1 }
 0x1b8   :  { %v203_v30 = vadd.f32 %v330_v28, %v202_v29  ;;  %v395_v31 = vpop.f32.mrb[1].mxu1 }
 0x1b9   :  { %v205_v32 = vpop.f32.mrb[2].mxu1 }
 0x1ba   :  { %v208_v33 = vmax.f32 %v203_v30, 0.0  ;;  %v396_v34 = vpop.f32.mrb[3].mxu1 }
 0x1bc   :  { %v209_v35 = vpack.c.bf16 %v208_v33, %v208_v33 }
 0x1be   :  { %414 = vmatmul.mubr.bf16.vlgmr.msra.gmra.mrb[4].mxu0 %v209_v35 }
 0x291   :  { %v315_v37 = vpop.f32.mrb[4].mxu0 }
 0x292   :  { %v316_v38 = vadd.f32 %v339_v36, %v315_v37  ;;  %v415_v39 = vpop.f32.mrb[5].mxu0 }
 0x293   :  { %v318_v40 = vpop.f32.mrb[6].mxu0 }
 0x294   :  { %321 = vst [vmem:[%s579_s7] sm:$0xff] %v316_v38  ;;  %v416_v41 = vpop.f32.mrb[7].mxu0 }

</bundles_post_ra>
